<compile_context>
chip_gen: v6e
topology: v6e:2x2x1
jax: 0.10.0
libtpu: 0.0.40
codegen_flags: <defaults>
</compile_context>

<pallas_src>
import jax
import jax.numpy as jnp
from jax.experimental import pallas as pl
from jax.experimental.pallas import tpu as pltpu


# --------------------------------------------------------------------------- #
# Kernels
# --------------------------------------------------------------------------- #


def mf_gather_kernel(u_idx_ref, i_idx_ref, ut_ref, it_ref, b_ref, out_ref):
    """Primary path: in-kernel gather + rating, batch in lanes.

    u_idx_ref : (1, TB)      int32  user indices for this batch tile
    i_idx_ref : (1, TB)      int32  item indices for this batch tile
    ut_ref    : (Ki, NU_pad) f32    transposed folded user table (user_T @ user_A @ item_A^T)^T
    it_ref    : (Ki, NI_pad) f32    transposed item table item_T^T
    b_ref     : (1,)         f32    scalar bias (SMEM)
    out_ref   : (1, TB)      f32    ratings (lane-dense)
    """
    ki, nu = ut_ref.shape
    ni = it_ref.shape[1]
    tb = out_ref.shape[1]

    u_idx = u_idx_ref[...]                                            # (1, TB) int32
    i_idx = i_idx_ref[...]

    # One-hot row selectors with batch in lanes (gather-as-matmul; exact 0/1 values,
    # padded table rows are never selected because every index < original row count).
    rows_u = jax.lax.broadcasted_iota(jnp.int32, (nu, tb), 0)
    rows_i = jax.lax.broadcasted_iota(jnp.int32, (ni, tb), 0)
    oh_u = jnp.where(rows_u == u_idx, 1.0, 0.0).astype(jnp.float32)   # (NU_pad, TB)
    oh_i = jnp.where(rows_i == i_idx, 1.0, 0.0).astype(jnp.float32)   # (NI_pad, TB)

    g_u = jnp.dot(ut_ref[...], oh_u, preferred_element_type=jnp.float32)  # (Ki, TB)
    g_i = jnp.dot(it_ref[...], oh_i, preferred_element_type=jnp.float32)  # (Ki, TB)

    # Lane-dense VPU multiply + short sublane reduce -> (1, TB), stored directly.
    out_ref[...] = jnp.sum(g_u * g_i, axis=0, keepdims=True) + b_ref[0]


def mf_dot_kernel(tu_ref, ti_ref, b_ref, out_ref):
    """Fallback path (large tables): rows already gathered by XLA.

    tu_ref : (TB, Ki) f32  gathered folded-user rows (user_TM[user_indices])
    ti_ref : (TB, Ki) f32  gathered item rows        (item_T[item_indices])
    b_ref  : (1,)     f32  scalar bias (SMEM)
    out_ref: (1, TB)  f32  ratings
    """
    r = jnp.sum(tu_ref[...] * ti_ref[...], axis=-1)                   # (TB,)
    out_ref[...] = (r + b_ref[0]).reshape(out_ref.shape)


# --------------------------------------------------------------------------- #
# Tiling helpers
# --------------------------------------------------------------------------- #


def _round_up(x, m):
    return pl.cdiv(x, m) * m


def _pick_tb(batch, cap):
    """Multiple-of-128 batch tile minimizing padding; >= 2 grid tiles when the batch
    allows, so the ("parallel",) batch axis can shard across v7x's two TensorCores."""
    n128 = pl.cdiv(batch, 128)
    if n128 <= 1:
        return 128
    max_tb = min(cap, 128 * pl.cdiv(n128, 2))
    max_tb = max(128, (max_tb // 128) * 128)
    best_tb, best_pad = 128, None
    tb = max_tb
    while tb >= 128:
        pad = _round_up(batch, tb) - batch
        if best_pad is None or pad < best_pad:
            best_tb, best_pad = tb, pad
        tb -= 128
    return best_tb


# --------------------------------------------------------------------------- #
# Forward wrapper
# --------------------------------------------------------------------------- #


def _forward_vmem_tables(u_idx, i_idx, user_TM, item_T, bias, batch):
    n_users, ki = user_TM.shape
    m_items = item_T.shape[0]

    tb = _pick_tb(batch, cap=512)        # small tiles keep the one-hot intermediates tiny
    b_pad = _round_up(batch, tb)
    num_tiles = b_pad // tb

    # Pad table rows to a multiple of 128 (zero rows, never selected) and transpose
    # once (amortized model prep) so batch sits in lanes inside the kernel.
    nu_pad = _round_up(n_users, 128)
    ni_pad = _round_up(m_items, 128)
    ut_t = jnp.pad(user_TM, ((0, nu_pad - n_users), (0, 0))).T        # (Ki, NU_pad)
    it_t = jnp.pad(item_T, ((0, ni_pad - m_items), (0, 0))).T         # (Ki, NI_pad)

    u_idx2 = jnp.pad(u_idx, (0, b_pad - batch)).reshape(1, b_pad)
    i_idx2 = jnp.pad(i_idx, (0, b_pad - batch)).reshape(1, b_pad)

    out = pl.pallas_call(
        mf_gather_kernel,
        out_shape=jax.ShapeDtypeStruct((1, b_pad), jnp.float32),
        grid=(num_tiles,),
        in_specs=[
            pl.BlockSpec((1, tb), lambda i: (0, i)),
            pl.BlockSpec((1, tb), lambda i: (0, i)),
            # Constant block index -> tables are DMA'd once and stay resident in VMEM.
            pl.BlockSpec((ki, nu_pad), lambda i: (0, 0)),
            pl.BlockSpec((ki, ni_pad), lambda i: (0, 0)),
            pl.BlockSpec(memory_space=pltpu.MemorySpace.SMEM),        # scalar bias
        ],
        out_specs=pl.BlockSpec((1, tb), lambda i: (0, i)),
        compiler_params=pltpu.CompilerParams(
            dimension_semantics=("parallel",),
        ),
    )(u_idx2, i_idx2, ut_t, it_t, bias)
    return out[0, :batch]


def _forward_xla_gather(u_idx, i_idx, user_TM, item_T, bias, batch):
    ki = item_T.shape[1]
    tb = _pick_tb(batch, cap=1024)
    b_pad = _round_up(batch, tb)
    num_tiles = b_pad // tb

    u_idx_p = jnp.pad(u_idx, (0, b_pad - batch))
    i_idx_p = jnp.pad(i_idx, (0, b_pad - batch))
    # Row gather stays in XLA when the tables are too large for VMEM residency.
    tu = jnp.take(user_TM, u_idx_p, axis=0)                           # (b_pad, Ki)
    ti = jnp.take(item_T, i_idx_p, axis=0)                            # (b_pad, Ki)

    out = pl.pallas_call(
        mf_dot_kernel,
        out_shape=jax.ShapeDtypeStruct((1, b_pad), jnp.float32),
        grid=(num_tiles,),
        in_specs=[
            pl.BlockSpec((tb, ki), lambda i: (i, 0)),
            pl.BlockSpec((tb, ki), lambda i: (i, 0)),
            pl.BlockSpec(memory_space=pltpu.MemorySpace.SMEM),        # scalar bias
        ],
        out_specs=pl.BlockSpec((1, tb), lambda i: (0, i)),
        compiler_params=pltpu.CompilerParams(
            dimension_semantics=("parallel",),
        ),
    )(tu, ti, bias)
    return out[0, :batch]


def mf_forward(user_indices, item_indices, params, *, use_vmem_tables=None):
    """Pallas forward for the sparse MFModel branch. Returns (B,) float32 ratings."""
    user_T, item_T = params["user_T"], params["item_T"]
    user_A, item_A = params["user_A"], params["item_A"]
    bias = params["bias"].reshape(1).astype(jnp.float32)

    n_users = user_T.shape[0]
    m_items, ki = item_T.shape
    batch = user_indices.shape[0]

    hp = jax.lax.Precision.HIGHEST
    # Exact algebraic fold (once per model, amortized):
    #   rating_b = user_TM[u_b] . item_T[i_b] + bias,  user_TM = user_T @ user_A @ item_A^T
    m = jnp.matmul(user_A, item_A.T, precision=hp)                    # (Ku, Ki)
    user_TM = jnp.matmul(user_T, m, precision=hp)                     # (n_users, Ki)

    u_idx = user_indices.astype(jnp.int32)
    i_idx = item_indices.astype(jnp.int32)

    if use_vmem_tables is None:
        # Gate on the VMEM footprint of resident tables + one-hot intermediates
        # (v7x has only 64 MiB physical VMEM; stay well under the 32 MiB scoped default).
        tb_probe = _pick_tb(batch, cap=512)
        nu_pad = _round_up(n_users, 128)
        ni_pad = _round_up(m_items, 128)
        footprint = (nu_pad + ni_pad) * (ki + tb_probe) * 4
        use_vmem_tables = footprint <= (8 << 20)

    if use_vmem_tables:
        return _forward_vmem_tables(u_idx, i_idx, user_TM, item_T, bias, batch)
    return _forward_xla_gather(u_idx, i_idx, user_TM, item_T, bias, batch)


# --------------------------------------------------------------------------- #
# Parameter init + pure-JAX reference (PyTorch op order)
# --------------------------------------------------------------------------- #


def init_weight(key, n, m):
    # JAX equivalent of init_weight(): abs(sqrt(2/n) * randn(n, m)), float32
    limit = jnp.sqrt(2.0 / n)
    return jnp.abs(limit * jax.random.normal(key, (n, m), dtype=jnp.float32))


def make_params(key, n_users, m_items, user_anchors, item_anchors, latent_dim):
    k = jax.random.split(key, 5)
    return {
        "user_T": init_weight(k[0], n_users, user_anchors),
        "item_T": init_weight(k[1], m_items, item_anchors),
        "user_A": init_weight(k[2], user_anchors, latent_dim),
        "item_A": init_weight(k[3], item_anchors, latent_dim),
        # MFModel initializes bias to 0.0; use a nonzero value so the bias path
        # is exercised by the correctness check.
        "bias": jax.random.normal(k[4], (), dtype=jnp.float32),
    }


def mf_reference(user_indices, item_indices, params):
    hp = jax.lax.Precision.HIGHEST
    u_emb = jnp.matmul(params["user_T"][user_indices], params["user_A"], precision=hp)
    i_emb = jnp.matmul(params["item_T"][item_indices], params["item_A"], precision=hp)
    return jnp.einsum("nd,nd->n", u_emb, i_emb, precision=hp) + params["bias"]


if __name__ == "__main__":
    n_users, m_items = 64, 100
    user_anchors, item_anchors = 16, 16
    latent_dim = 32
    batch = 8

    key = jax.random.PRNGKey(0)
    k_params, k_u, k_i = jax.random.split(key, 3)
    params = make_params(k_params, n_users, m_items,
                         user_anchors, item_anchors, latent_dim)

    user_indices = jax.random.randint(k_u, (batch,), 0, n_users, dtype=jnp.int32)
    item_indices = jax.random.randint(k_i, (batch,), 0, m_items, dtype=jnp.int32)

    ref = mf_reference(user_indices, item_indices, params)

    # Primary path: tables resident in VMEM, in-kernel (one-hot) gather, batch in lanes.
    out = jax.block_until_ready(mf_forward(user_indices, item_indices, params))
    assert out.shape == (batch,) and out.dtype == jnp.float32
    max_err = jnp.max(jnp.abs(out - ref))
    assert jnp.allclose(out, ref, atol=1e-3, rtol=1e-3), max_err

    # Fallback path (exercised explicitly): XLA row gather + dot/reduce kernel.
    out_fb = jax.block_until_ready(
        mf_forward(user_indices, item_indices, params, use_vmem_tables=False))
    max_err_fb = jnp.max(jnp.abs(out_fb - ref))
    assert jnp.allclose(out_fb, ref, atol=1e-3, rtol=1e-3), max_err_fb

    print("KERNEL_OK")
</pallas_src>

<mosaic_0001>
module attributes {stable_mosaic.version = 11 : i64} {
  func.func @mf_gather_kernel(%arg0: i32, %arg1: memref<1x128xi32, #tpu.memory_space<vmem>>, %arg2: memref<1x128xi32, #tpu.memory_space<vmem>>, %arg3: memref<16x128xf32, #tpu.memory_space<vmem>>, %arg4: memref<16x128xf32, #tpu.memory_space<vmem>>, %arg5: memref<1xf32, #tpu.memory_space<smem>>, %arg6: memref<1x128xf32, #tpu.memory_space<vmem>>) attributes {dimension_semantics = [#tpu.dimension_semantics<parallel>], iteration_bounds = array<i64: 1>, scalar_prefetch = 0 : i64, scratch_operands = 0 : i64, tpu.core_type = #tpu.core_type<tc>, window_params = [{transform_indices = @transform_0, window_bounds = array<i64: 1, 128>}, {transform_indices = @transform_1, window_bounds = array<i64: 1, 128>}, {pipeline_mode = #tpu.pipeline_mode<synchronous>, transform_indices = @transform_2, window_bounds = array<i64: 16, 128>}, {pipeline_mode = #tpu.pipeline_mode<synchronous>, transform_indices = @transform_3, window_bounds = array<i64: 16, 128>}, {transform_indices = @transform_4, window_bounds = array<i64: 1>}, {transform_indices = @transform_5, window_bounds = array<i64: 1, 128>}]} {
    %c0 = arith.constant 0 : index
    %c0_0 = arith.constant 0 : index
    %0 = vector.load %arg1[%c0, %c0_0] : memref<1x128xi32, #tpu.memory_space<vmem>>, vector<1x128xi32>
    %c0_1 = arith.constant 0 : index
    %c0_2 = arith.constant 0 : index
    %1 = vector.load %arg2[%c0_1, %c0_2] : memref<1x128xi32, #tpu.memory_space<vmem>>, vector<1x128xi32>
    %2 = tpu.iota {dimensions = array<i32: 0>} : vector<128x128xi32>
    %3 = tpu.iota {dimensions = array<i32: 0>} : vector<128x128xi32>
    %4 = vector.broadcast %0 : vector<1x128xi32> to vector<128x128xi32>
    %5 = arith.cmpi eq, %2, %4 : vector<128x128xi32>
    %cst = arith.constant 1.000000e+00 : f32
    %cst_3 = arith.constant 0.000000e+00 : f32
    %6 = vector.broadcast %cst : f32 to vector<128x128xf32>
    %7 = vector.broadcast %cst_3 : f32 to vector<128x128xf32>
    %8 = arith.select %5, %6, %7 : vector<128x128xi1>, vector<128x128xf32>
    %9 = vector.broadcast %1 : vector<1x128xi32> to vector<128x128xi32>
    %10 = arith.cmpi eq, %3, %9 : vector<128x128xi32>
    %cst_4 = arith.constant 1.000000e+00 : f32
    %cst_5 = arith.constant 0.000000e+00 : f32
    %11 = vector.broadcast %cst_4 : f32 to vector<128x128xf32>
    %12 = vector.broadcast %cst_5 : f32 to vector<128x128xf32>
    %13 = arith.select %10, %11, %12 : vector<128x128xi1>, vector<128x128xf32>
    %c0_6 = arith.constant 0 : index
    %c0_7 = arith.constant 0 : index
    %14 = vector.load %arg3[%c0_6, %c0_7] : memref<16x128xf32, #tpu.memory_space<vmem>>, vector<16x128xf32>
    %cst_8 = arith.constant dense<0.000000e+00> : vector<16x128xf32>
    %15 = tpu.matmul %14, %8, %cst_8 {dimension_numbers = #tpu.dot_dimension_numbers<[1], [0], [0], [1], [0, 0, 1, 1], [], []>} : vector<16x128xf32>, vector<128x128xf32>, vector<16x128xf32> -> vector<16x128xf32>
    %c0_9 = arith.constant 0 : index
    %c0_10 = arith.constant 0 : index
    %16 = vector.load %arg4[%c0_9, %c0_10] : memref<16x128xf32, #tpu.memory_space<vmem>>, vector<16x128xf32>
    %cst_11 = arith.constant dense<0.000000e+00> : vector<16x128xf32>
    %17 = tpu.matmul %16, %13, %cst_11 {dimension_numbers = #tpu.dot_dimension_numbers<[1], [0], [0], [1], [0, 0, 1, 1], [], []>} : vector<16x128xf32>, vector<128x128xf32>, vector<16x128xf32> -> vector<16x128xf32>
    %18 = arith.mulf %15, %17 : vector<16x128xf32>
    %cst_12 = arith.constant dense<0.000000e+00> : vector<128xf32>
    %19 = vector.multi_reduction <add>, %18, %cst_12 [0] : vector<16x128xf32> to vector<128xf32>
    %20 = vector.shape_cast %19 : vector<128xf32> to vector<1x128xf32>
    %c0_13 = arith.constant 0 : index
    %21 = memref.load %arg5[%c0_13] : memref<1xf32, #tpu.memory_space<smem>>
    %22 = vector.broadcast %21 : f32 to vector<1x128xf32>
    %23 = arith.addf %20, %22 : vector<1x128xf32>
    %c0_14 = arith.constant 0 : index
    %c0_15 = arith.constant 0 : index
    %24 = vector.load %arg6[%c0_14, %c0_15] : memref<1x128xf32, #tpu.memory_space<vmem>>, vector<1x128xf32>
    tpu.vector_store %arg6[%c0_14, %c0_15], %23 {strides = array<i32>} : memref<1x128xf32, #tpu.memory_space<vmem>>, vector<1x128xf32>,
    return
  }
  func.func @transform_0(%arg0: i32) -> (i32, i32) {
    %c0_i32 = arith.constant 0 : i32
    %c0_i32_0 = arith.constant 0 : i32
    return %c0_i32, %arg0 : i32, i32
  }
  func.func @transform_1(%arg0: i32) -> (i32, i32) {
    %c0_i32 = arith.constant 0 : i32
    %c0_i32_0 = arith.constant 0 : i32
    return %c0_i32, %arg0 : i32, i32
  }
  func.func @transform_2(%arg0: i32) -> (i32, i32) {
    %c0_i32 = arith.constant 0 : i32
    %c0_i32_0 = arith.constant 0 : i32
    %c0_i32_1 = arith.constant 0 : i32
    return %c0_i32, %c0_i32_0 : i32, i32
  }
  func.func @transform_3(%arg0: i32) -> (i32, i32) {
    %c0_i32 = arith.constant 0 : i32
    %c0_i32_0 = arith.constant 0 : i32
    %c0_i32_1 = arith.constant 0 : i32
    return %c0_i32, %c0_i32_0 : i32, i32
  }
  func.func @transform_4(%arg0: i32) -> i32 {
    %c0_i32 = arith.constant 0 : i32
    %c0_i32_0 = arith.constant 0 : i32
    return %c0_i32 : i32
  }
  func.func @transform_5(%arg0: i32) -> (i32, i32) {
    %c0_i32 = arith.constant 0 : i32
    %c0_i32_0 = arith.constant 0 : i32
    return %c0_i32, %arg0 : i32, i32
  }
}

</mosaic_0001>

<bundles_post_ra>
// kernel: tpu_custom_call.1
= control target key start
LH: loop header
LB: loop body
LE: loop exit
PB: predicated region body
PF: predicated region fallthrough
CT: control target
= control target key end

     0   :  { %11 = vsyncpa [#allocation4], 0  ;;  %s709_s0 = inlined_call_operand.vmem [shape: s32[1,128], index: 0, kind: input, shape index: {}]   ;;  %s710_s1 = inlined_call_operand.vmem [shape: s32[1,128], index: 1, kind: input, shape index: {}]   ;;  %s711_s2 = inlined_call_operand.hbm [shape: f32[16,128], index: 2, kind: input, shape index: {}]   ;;  %s712_s3 = inlined_call_operand.hbm [shape: f32[16,128], index: 3, kind: input, shape index: {}]   ;;  %s713_s4 = inlined_call_operand.<no memory space> [shape: f32[1], index: 4, kind: input, shape index: {}]   ;;  %s714_s5 = inlined_call_operand.hbm [shape: f32[1,128], index: 5, kind: output, shape index: {}]  }
   0x1   :  { %12 = vsyncpa [#allocation7], 0 }
   0x2   :  { %13 = vsyncpa [#allocation5], 0  ;;  %s536_s18 = smov [#allocation3]  }
   0x3   :  { %s23_s19 = sshll.u32 %s536_s18, 4  ;;  %s24_s19 = int_to_ptr.vmem [resolvable:$true] %s23_s19 }
   0x4   :  { %s478_s20 = scalar_lea.vmem %s24_s19, 256  ;;  %p483_p1 = scmp.lt.s32.totalorder %s24_s19, %s24_s19 }
   0x5   :  { %p479_p0 = scmp.ne.s32.totalorder %s24_s19, %s478_s20  ;;  %p484_p2 = scmp.lt.s32.totalorder %s478_s20, %s478_s20 }
   0x7   :  { %p485_p3 = por %p484_p2, %p483_p1 }
   0x9   :  { %p486_p4 = pnand %p485_p3, %p479_p0 }
   0xb   :  { %489 = shalt.err (!%p486_p4)
}
   0xc   :  { %s537_s21 = smov 128   ;;  %s538_s22 = smov 8  }
   0xd   :  { %29 = dma.hbm_to_vmem [thread:$0]  %s711_s2, 256, %s24_s19, [#allocation4], %s537_s21, %s537_s21, %s538_s22  }
   0xe   :  { %s539_s25 = smov [#allocation6]  }
   0xf   :  { %s35_s26 = sshll.u32 %s539_s25, 4  ;;  %s36_s26 = int_to_ptr.vmem [resolvable:$true] %s35_s26 }
  0x10   :  { %s498_s27 = scalar_lea.vmem %s36_s26, 256  ;;  %p503_p6 = scmp.lt.s32.totalorder %s36_s26, %s36_s26 }
  0x11   :  { %p499_p5 = scmp.ne.s32.totalorder %s36_s26, %s498_s27  ;;  %p504_p7 = scmp.lt.s32.totalorder %s498_s27, %s498_s27 }
  0x13   :  { %p505_p8 = por %p504_p7, %p503_p6 }
  0x15   :  { %p506_p9 = pnand %p505_p8, %p499_p5 }
  0x17   :  { %509 = shalt.err (!%p506_p9)
}
  0x18   :  { %41 = dma.hbm_to_vmem [thread:$0]  %s712_s3, 256, %s36_s26, [#allocation7], %s537_s21, %s537_s21, %s538_s22  }
  0x19   :  { %530 = dma.done.wait [#allocation4], 256  }
  0x1a   :  { %531 = vsyncadd [#allocation4], 4294967040 }
  0x1b   :  { %532 = dma.done.wait [#allocation7], 256  }
  0x1c   :  { %533 = vsyncadd [#allocation7], 4294967040  ;;  %v52_v0 = vlaneseq  ;;  %v586_v5 = vld [vmem:[%s709_s0] ss:$0 sm:$0xff]  ;;  %v540_v8 = vmov 1.0   ;;  %v218_v21 = vld [vmem:[#allocation6] sm:$0xff]  ;;  %v305_v36 = vstv %s713_s4 }
  0x1d   :  { %v591_v6 = vld [vmem:[%s710_s1] ss:$0 sm:$0xff]  ;;  %v142_v22 = vld [vmem:[#allocation3 + $0x8] sm:$0xff]  ;;  %v219_v23 = vld [vmem:[#allocation6 + $0x8] sm:$0xff]  ;;  %461 = vmatprep.mubr.f32.mxu1 %v218_v21  ;;  %s541_s7 = smov [#allocation8]  }
  0x1e   :  { %v578_v1 = vshrl.u32 %v52_v0, 7  ;;  %v141_v20 = vld [vmem:[#allocation3] sm:$0xff]  ;;  %s314_s8 = sshll.u32 %s541_s7, 4  ;;  %s315_s8 = int_to_ptr.vmem [resolvable:$true] %s314_s8 }
  0x1f   :  { %426 = vmatprep.mubr.f32.mxu0 %v141_v20  ;;  %s510_s9 = scalar_lea.vmem %s315_s8, 16  ;;  %s514_s10 = scalar_lea.vmem %s315_s8, 32 }
  0x20   :  { %v68_v2 = vadd.s32 120, %v578_v1  ;;  %v67_v3 = vadd.s32 112, %v578_v1  ;;  %v66_v4 = vadd.s32 104, %v578_v1  ;;  %v65_v7 = vadd.s32 96, %v578_v1  ;;  %p511_p10 = scmp.ne.s32.totalorder %s315_s8, %s510_s9  ;;  %p515_p11 = scmp.lt.s32.totalorder %s315_s8, %s315_s8 }
  0x21   :  { %v64_v9 = vadd.s32 88, %v578_v1  ;;  %v63_v10 = vadd.s32 80, %v578_v1  ;;  %v62_v11 = vadd.s32 72, %v578_v1  ;;  %v61_v12 = vadd.s32 64, %v578_v1  ;;  %p516_p12 = scmp.lt.s32.totalorder %s514_s10, %s510_s9 }
  0x22   :  { %vm88_vm0 = vcmp.eq.s32.totalorder %v68_v2, %v586_v5  ;;  %vm124_vm1 = vcmp.eq.s32.totalorder %v68_v2, %v591_v6  ;;  %vm87_vm2 = vcmp.eq.s32.totalorder %v67_v3, %v586_v5  ;;  %vm123_vm3 = vcmp.eq.s32.totalorder %v67_v3, %v591_v6 }
  0x23   :  { %394 = vmatprep.subr.msk.mxu0 %vm88_vm0, %v540_v8  ;;  %429 = vmatprep.subr.msk.mxu1 %vm124_vm1, %v540_v8  ;;  %vm86_vm4 = vcmp.eq.s32.totalorder %v66_v4, %v586_v5  ;;  %vm122_vm5 = vcmp.eq.s32.totalorder %v66_v4, %v591_v6  ;;  %vm85_vm6 = vcmp.eq.s32.totalorder %v65_v7, %v586_v5  ;;  %v60_v13 = vadd.s32 56, %v578_v1  ;;  %p517_p13 = por %p516_p12, %p515_p11 }
  0x24   :  { %395 = vmatpush3.msk.msra.mxu0 %vm88_vm0, %v540_v8  ;;  %430 = vmatpush3.msk.msra.mxu1 %vm124_vm1, %v540_v8  ;;  %vm121_vm7 = vcmp.eq.s32.totalorder %v65_v7, %v591_v6  ;;  %vm84_vm8 = vcmp.eq.s32.totalorder %v64_v9, %v586_v5  ;;  %vm120_vm9 = vcmp.eq.s32.totalorder %v64_v9, %v591_v6  ;;  %v59_v14 = vadd.s32 48, %v578_v1 }
  0x25   :  { %396 = vmatprep.subr.msk.mxu0 %vm87_vm2, %v540_v8  ;;  %431 = vmatprep.subr.msk.mxu1 %vm123_vm3, %v540_v8  ;;  %vm83_vm10 = vcmp.eq.s32.totalorder %v63_v10, %v586_v5  ;;  %vm119_vm11 = vcmp.eq.s32.totalorder %v63_v10, %v591_v6  ;;  %vm82_vm12 = vcmp.eq.s32.totalorder %v62_v11, %v586_v5  ;;  %v58_v15 = vadd.s32 40, %v578_v1  ;;  %p518_p0 = pnand %p517_p13, %p511_p10 }
  0x26   :  { %397 = vmatpush3.msk.msra.mxu0 %vm87_vm2, %v540_v8  ;;  %432 = vmatpush3.msk.msra.mxu1 %vm123_vm3, %v540_v8  ;;  %vm118_vm13 = vcmp.eq.s32.totalorder %v62_v11, %v591_v6  ;;  %vm81_vm14 = vcmp.eq.s32.totalorder %v61_v12, %v586_v5  ;;  %vm117_vm15 = vcmp.eq.s32.totalorder %v61_v12, %v591_v6  ;;  %v57_v16 = vadd.s32 32, %v578_v1 }
  0x27   :  { %398 = vmatprep.subr.msk.mxu0 %vm86_vm4, %v540_v8  ;;  %433 = vmatprep.subr.msk.mxu1 %vm122_vm5, %v540_v8  ;;  %vm80_vm0 = vcmp.eq.s32.totalorder %v60_v13, %v586_v5  ;;  %vm116_vm1 = vcmp.eq.s32.totalorder %v60_v13, %v591_v6  ;;  %vm79_vm2 = vcmp.eq.s32.totalorder %v59_v14, %v586_v5  ;;  %v56_v17 = vadd.s32 24, %v578_v1 }
  0x28   :  { %399 = vmatpush3.msk.msra.mxu0 %vm86_vm4, %v540_v8  ;;  %434 = vmatpush3.msk.msra.mxu1 %vm122_vm5, %v540_v8  ;;  %vm115_vm3 = vcmp.eq.s32.totalorder %v59_v14, %v591_v6  ;;  %vm78_vm4 = vcmp.eq.s32.totalorder %v58_v15, %v586_v5  ;;  %vm114_vm5 = vcmp.eq.s32.totalorder %v58_v15, %v591_v6  ;;  %v55_v18 = vadd.s32 16, %v578_v1 }
  0x29   :  { %400 = vmatprep.subr.msk.mxu0 %vm85_vm6, %v540_v8  ;;  %435 = vmatprep.subr.msk.mxu1 %vm121_vm7, %v540_v8  ;;  %v54_v19 = vadd.s32 8, %v578_v1 }
  0x2a   :  { %401 = vmatpush3.msk.msra.mxu0 %vm85_vm6, %v540_v8  ;;  %436 = vmatpush3.msk.msra.mxu1 %vm121_vm7, %v540_v8  ;;  %vm77_vm6 = vcmp.eq.s32.totalorder %v57_v16, %v586_v5  ;;  %vm113_vm7 = vcmp.eq.s32.totalorder %v57_v16, %v591_v6 }
  0x2b   :  { %402 = vmatprep.subr.msk.mxu0 %vm84_vm8, %v540_v8  ;;  %437 = vmatprep.subr.msk.mxu1 %vm120_vm9, %v540_v8 }
  0x2c   :  { %403 = vmatpush3.msk.msra.mxu0 %vm84_vm8, %v540_v8  ;;  %438 = vmatpush3.msk.msra.mxu1 %vm120_vm9, %v540_v8  ;;  %vm76_vm8 = vcmp.eq.s32.totalorder %v56_v17, %v586_v5  ;;  %vm112_vm9 = vcmp.eq.s32.totalorder %v56_v17, %v591_v6 }
  0x2d   :  { %404 = vmatprep.subr.msk.mxu0 %vm83_vm10, %v540_v8  ;;  %439 = vmatprep.subr.msk.mxu1 %vm119_vm11, %v540_v8 }
  0x2e   :  { %405 = vmatpush3.msk.msra.mxu0 %vm83_vm10, %v540_v8  ;;  %440 = vmatpush3.msk.msra.mxu1 %vm119_vm11, %v540_v8  ;;  %vm75_vm10 = vcmp.eq.s32.totalorder %v55_v18, %v586_v5  ;;  %vm111_vm11 = vcmp.eq.s32.totalorder %v55_v18, %v591_v6 }
  0x2f   :  { %406 = vmatprep.subr.msk.mxu0 %vm82_vm12, %v540_v8  ;;  %441 = vmatprep.subr.msk.mxu1 %vm118_vm13, %v540_v8 }
  0x30   :  { %407 = vmatpush3.msk.msra.mxu0 %vm82_vm12, %v540_v8  ;;  %442 = vmatpush3.msk.msra.mxu1 %vm118_vm13, %v540_v8  ;;  %vm74_vm12 = vcmp.eq.s32.totalorder %v54_v19, %v586_v5  ;;  %vm110_vm13 = vcmp.eq.s32.totalorder %v54_v19, %v591_v6 }
  0x31   :  { %408 = vmatprep.subr.msk.mxu0 %vm81_vm14, %v540_v8  ;;  %443 = vmatprep.subr.msk.mxu1 %vm117_vm15, %v540_v8 }
  0x32   :  { %409 = vmatpush3.msk.msra.mxu0 %vm81_vm14, %v540_v8  ;;  %444 = vmatpush3.msk.msra.mxu1 %vm117_vm15, %v540_v8  ;;  %vm73_vm14 = vcmp.eq.s32.totalorder %v578_v1, %v586_v5  ;;  %vm109_vm15 = vcmp.eq.s32.totalorder %v578_v1, %v591_v6 }
  0x33   :  { %410 = vmatprep.subr.msk.mxu0 %vm80_vm0, %v540_v8  ;;  %445 = vmatprep.subr.msk.mxu1 %vm116_vm1, %v540_v8 }
  0x34   :  { %411 = vmatpush3.msk.msra.mxu0 %vm80_vm0, %v540_v8  ;;  %446 = vmatpush3.msk.msra.mxu1 %vm116_vm1, %v540_v8 }
  0x35   :  { %412 = vmatprep.subr.msk.mxu0 %vm79_vm2, %v540_v8  ;;  %447 = vmatprep.subr.msk.mxu1 %vm115_vm3, %v540_v8 }
  0x36   :  { %413 = vmatpush3.msk.msra.mxu0 %vm79_vm2, %v540_v8  ;;  %448 = vmatpush3.msk.msra.mxu1 %vm115_vm3, %v540_v8 }
  0x37   :  { %414 = vmatprep.subr.msk.mxu0 %vm78_vm4, %v540_v8  ;;  %449 = vmatprep.subr.msk.mxu1 %vm114_vm5, %v540_v8 }
  0x38   :  { %415 = vmatpush3.msk.msra.mxu0 %vm78_vm4, %v540_v8  ;;  %450 = vmatpush3.msk.msra.mxu1 %vm114_vm5, %v540_v8 }
  0x39   :  { %416 = vmatprep.subr.msk.mxu0 %vm77_vm6, %v540_v8  ;;  %451 = vmatprep.subr.msk.mxu1 %vm113_vm7, %v540_v8 }
  0x3a   :  { %417 = vmatpush3.msk.msra.mxu0 %vm77_vm6, %v540_v8  ;;  %452 = vmatpush3.msk.msra.mxu1 %vm113_vm7, %v540_v8 }
  0x3b   :  { %418 = vmatprep.subr.msk.mxu0 %vm76_vm8, %v540_v8  ;;  %453 = vmatprep.subr.msk.mxu1 %vm112_vm9, %v540_v8 }
  0x3c   :  { %419 = vmatpush3.msk.msra.mxu0 %vm76_vm8, %v540_v8  ;;  %454 = vmatpush3.msk.msra.mxu1 %vm112_vm9, %v540_v8 }
  0x3d   :  { %420 = vmatprep.subr.msk.mxu0 %vm75_vm10, %v540_v8  ;;  %455 = vmatprep.subr.msk.mxu1 %vm111_vm11, %v540_v8 }
  0x3e   :  { %421 = vmatpush3.msk.msra.mxu0 %vm75_vm10, %v540_v8  ;;  %456 = vmatpush3.msk.msra.mxu1 %vm111_vm11, %v540_v8 }
  0x3f   :  { %422 = vmatprep.subr.msk.mxu0 %vm74_vm12, %v540_v8  ;;  %457 = vmatprep.subr.msk.mxu1 %vm110_vm13, %v540_v8 }
  0x40   :  { %423 = vmatpush3.msk.msra.mxu0 %vm74_vm12, %v540_v8  ;;  %458 = vmatpush3.msk.msra.mxu1 %vm110_vm13, %v540_v8 }
  0x41   :  { %424 = vmatprep.subr.msk.mxu0 %vm73_vm14, %v540_v8  ;;  %459 = vmatprep.subr.msk.mxu1 %vm109_vm15, %v540_v8 }
  0x42   :  { %425 = vmatpush3.msk.msra.mxu0 %vm73_vm14, %v540_v8  ;;  %460 = vmatpush3.msk.msra.mxu1 %vm109_vm15, %v540_v8 }
  0x43   :  { %427 = vmatmul.mubr.f32.vlgmr.msra.gmra.mxu0 %v142_v22  ;;  %462 = vmatmul.mubr.f32.vlgmr.msra.gmra.mxu1 %v219_v23 }
 0x103   :  { %v428_v24 = vpop.f32.mrf.mxu0  ;;  %v463_v25 = vpop.f32.mrf.mxu1 }
 0x104   :  { %v296_v28 = vmul.f32 %v463_v25, %v428_v24 }
 0x105   :  { %v209_v26 = vpop.f32.mrf.mxu0  ;;  %v286_v27 = vpop.f32.mrf.mxu1 }
 0x106   :  { %v295_v29 = vmul.f32 %v286_v27, %v209_v26 }
 0x108   :  { %v297_v30 = vadd.f32 %v296_v28, %v295_v29 }
 0x10a   :  { %v298_v31 = vrot.slane %v297_v30, 4 }
 0x10c   :  { %v299_v32 = vadd.f32 %v298_v31, %v297_v30 }
 0x10e   :  { %v300_v33 = vrot.slane %v299_v32, 2 }
 0x110   :  { %v301_v34 = vadd.f32 %v300_v33, %v299_v32 }
 0x112   :  { %v302_v35 = vrot.slane %v301_v34, 1 }
 0x114   :  { %v303_v37 = vadd.f32 %v302_v35, %v301_v34 }
 0x116   :  { %v306_v38 = vadd.f32 %v305_v36, %v303_v37 }
 0x118   :  { %307 = vst [vmem:[#allocation8] sm:$0x1] %v306_v38 }
 0x119   :  { %521 = shalt.err (!%p518_p0)
}
 0x11a   :  { %317 = dma.vmem_to_hbm [thread:$0]  %s315_s8, 16, %s714_s5, [#allocation5]  }
 0x11b   :  { %534 = dma.done.wait [#allocation5], 16  }
 0x11c   :  { %535 = vsyncadd [#allocation5], 4294967280 }
 0x11d   :  { %321 = vsyncpa [#allocation4], 1 }
 0x11e   :  { %322 = vsyncpa [#allocation7], 1 }
 0x11f   :  { %323 = vsyncpa [#allocation5], 1 }

</bundles_post_ra>
